<compile_context>
chip_gen: v7x
topology: tpu7x:2x2x1
jax: 0.10.0
libtpu: 0.0.40
codegen_flags: <defaults>
</compile_context>

<pallas_src>
import functools
import math

import jax
import jax.numpy as jnp
from jax.experimental import pallas as pl
from jax.experimental.pallas import tpu as pltpu


def _complex_block_matrix(w):
    """(Cin, Cout) complex -> (2*Cin, 2*Cout) real block matrix such that
    [xr | xi] @ block == [re(x @ w) | im(x @ w)]."""
    wr = jnp.real(w).astype(jnp.float32)
    wi = jnp.imag(w).astype(jnp.float32)
    top = jnp.concatenate([wr, wi], axis=1)
    bot = jnp.concatenate([-wi, wr], axis=1)
    return jnp.concatenate([top, bot], axis=0)


# -----------------------------------------------------------------------------
# Pallas kernel: packed complex spectral MLP
# (module defaults: spectral_layers=1, bias=False, drop_rate=0.0,
#  operator_type='diagonal', complex_activation='real')
#   [hr|hi] = X @ W0_block                       (one MXU dot)
#   hr      = relu(hr)   (ComplexReLU 'real': imaginary part untouched)
#   [or|oi] = [hr|hi] @ Wout_block               (one MXU dot)
# -----------------------------------------------------------------------------
def spectral_mlp_kernel(x_ref, w0_ref, wout_ref, o_ref, *, hidden):
    h = jnp.dot(x_ref[...], w0_ref[...], preferred_element_type=jnp.float32)
    # ComplexReLU(mode='real'): ReLU only on the first `hidden` lanes (real part).
    lane = jax.lax.broadcasted_iota(jnp.int32, h.shape, 1)
    h = jnp.where(lane < hidden, jnp.maximum(h, 0.0), h)
    o_ref[...] = jnp.dot(h.astype(wout_ref.dtype), wout_ref[...],
                         preferred_element_type=jnp.float32).astype(o_ref.dtype)


def _pick_tm(m, lanes_in, lanes_hidden, lanes_out, act_itemsize,
             tm_max=1024, vmem_budget_bytes=48 * 1024 * 1024):
    """Largest row tile fitting a VMEM budget that is conservative for v7x
    (64 MiB/TC; v5e/v6e have 128 MiB).  Budget = double-buffered activation
    in/out blocks + double-buffered (grid-invariant) weight blocks + the f32
    hidden intermediate."""
    w_bytes = 2 * (lanes_in * lanes_hidden + lanes_hidden * lanes_out) * act_itemsize
    per_row = 2 * (lanes_in * act_itemsize + lanes_out * 4) + lanes_hidden * 4
    tm = (vmem_budget_bytes - w_bytes) // max(per_row, 1)
    tm = max(8, min(int(tm), tm_max))
    if m <= tm:
        return m                      # single block == full extent (always legal)
    if tm >= 128:
        return (tm // 128) * 128      # 128-aligned tile; ragged last block is fine
    return (tm // 8) * 8


def spectral_mlp_pallas(x_spec, w0_block, wout_block, *,
                        compute_dtype=jnp.float32, tm_max=1024):
    """x_spec: complex64 (B, C_in, Hm, Wm); w0_block: (2*C_in, 2*hidden) real;
    wout_block: (2*hidden, 2*C_out) real.  Returns complex64 (B, C_out, Hm, Wm)."""
    B, C_in, Hm, Wm = x_spec.shape
    two_cin, two_hidden = w0_block.shape
    two_cout = wout_block.shape[1]
    hidden = two_hidden // 2
    C_out = two_cout // 2
    assert two_cin == 2 * C_in

    # Lane-dense activation slab: (B, C, Hm, Wm) complex -> (M, 2*C) real, with
    # real channels in the first C lanes and imaginary in the next C.  Built as
    # one fused concat/transpose/reshape; NO explicit row padding (Pallas
    # handles the ragged last block, avoiding an extra HBM copy of the slab).
    x_slab = jnp.concatenate([jnp.real(x_spec), jnp.imag(x_spec)], axis=1)
    x_slab = x_slab.transpose(0, 2, 3, 1).reshape(-1, two_cin).astype(compute_dtype)
    M = x_slab.shape[0]

    act_itemsize = jnp.dtype(compute_dtype).itemsize
    tm = _pick_tm(M, two_cin, two_hidden, two_cout, act_itemsize, tm_max=tm_max)
    grid = pl.cdiv(M, tm)

    w0_block = w0_block.astype(compute_dtype)
    wout_block = wout_block.astype(compute_dtype)

    out = pl.pallas_call(
        functools.partial(spectral_mlp_kernel, hidden=hidden),
        out_shape=jax.ShapeDtypeStruct((M, two_cout), jnp.float32),
        grid_spec=pltpu.PrefetchScalarGridSpec(
            num_scalar_prefetch=0,
            grid=(grid,),
            in_specs=[
                pl.BlockSpec((tm, two_cin), lambda i: (i, 0)),
                # Weight blocks are grid-invariant.  (For production channel
                # counts they could be single-buffered via
                # pipeline_mode=pl.Buffered(1) to free VMEM for a larger tm;
                # left at the default here since they are tiny.)
                pl.BlockSpec((two_cin, two_hidden), lambda i: (0, 0)),
                pl.BlockSpec((two_hidden, two_cout), lambda i: (0, 0)),
            ],
            out_specs=pl.BlockSpec((tm, two_cout), lambda i: (i, 0)),
        ),
        compiler_params=pltpu.CompilerParams(
            # Rows of M are independent -> shards across the 2 TCs on v7x
            # (no-op on single-TC v5e/v6e).
            dimension_semantics=("parallel",),
            # Explicit scoped-VMEM limit with headroom under v7x's 64 MiB/TC;
            # safe on v5e/v6e (128 MiB physical).
            vmem_limit_bytes=56 * 1024 * 1024,
        ),
    )(x_slab, w0_block, wout_block)

    out_c = jax.lax.complex(out[:, :C_out], out[:, C_out:]).astype(jnp.complex64)
    return out_c.reshape(B, Hm, Wm, C_out).transpose(0, 3, 1, 2)


# -----------------------------------------------------------------------------
# SpectralAttention module (deterministic synthetic params)
# -----------------------------------------------------------------------------
class SpectralAttentionPallas:
    def __init__(self, in_channels, out_channels, hidden_size_factor=2,
                 key=None, compute_dtype=jnp.float32):
        self.in_channels = in_channels
        self.out_channels = out_channels
        self.compute_dtype = compute_dtype
        self.hidden = int(hidden_size_factor * in_channels)
        scale = math.sqrt(2.0 / float(in_channels))
        if key is None:
            key = jax.random.PRNGKey(0)
        k1, k2, k3, k4 = jax.random.split(key, 4)
        # complex Gaussian weights (real/imag each N(0, 1/2) like torch complex randn)
        inv_sqrt2 = 1.0 / math.sqrt(2.0)
        self.w0 = (scale * inv_sqrt2 *
                   (jax.random.normal(k1, (in_channels, self.hidden))
                    + 1j * jax.random.normal(k2, (in_channels, self.hidden)))
                   ).astype(jnp.complex64)
        self.wout = (scale * inv_sqrt2 *
                     (jax.random.normal(k3, (self.hidden, out_channels))
                      + 1j * jax.random.normal(k4, (self.hidden, out_channels)))
                     ).astype(jnp.complex64)
        # Hoisted weight prep: real block matrices built once at init, so no
        # per-forward real/imag extraction, cast, or concat XLA ops.
        self.w0_block = _complex_block_matrix(self.w0).astype(compute_dtype)
        self.wout_block = _complex_block_matrix(self.wout).astype(compute_dtype)

    def __call__(self, x):
        dtype = x.dtype
        residual = x  # scale_residual is False (same grid/resolution both ways)
        x = x.astype(jnp.float32)
        H, W = x.shape[-2:]
        # forward_transform stand-in (real -> complex spectral coefficients)
        xs = jnp.fft.rfft2(x, axes=(-2, -1)).astype(jnp.complex64)
        # spectral MLP hot path in Pallas
        xs = spectral_mlp_pallas(xs, self.w0_block, self.wout_block,
                                 compute_dtype=self.compute_dtype)
        # inverse_transform stand-in (complex spectral -> real grid)
        x_out = jnp.fft.irfft2(xs, s=(H, W), axes=(-2, -1)).astype(dtype)
        return x_out, residual


# pure-JAX reference of the spectral MLP for correctness checking
def _mlp_ref(xs, w0, wout):
    h = jnp.einsum('bixy,io->boxy', xs, w0)
    h = jnp.maximum(h.real, 0.0) + 1j * h.imag
    return jnp.einsum('bixy,io->boxy', h, wout)


if __name__ == "__main__":
    key = jax.random.PRNGKey(0)
    kx, kp = jax.random.split(key)

    B, C, H, W = 2, 4, 16, 16
    x = jax.random.normal(kx, (B, C, H, W), dtype=jnp.float32)

    module = SpectralAttentionPallas(in_channels=C, out_channels=C,
                                     hidden_size_factor=2, key=kp)

    out, residual = module(x)
    out = jax.block_until_ready(out)
    residual = jax.block_until_ready(residual)
    assert out.shape == (B, C, H, W)
    assert residual.shape == (B, C, H, W)

    # sanity check the Pallas packed spectral MLP against a pure-JAX reference
    xs = jnp.fft.rfft2(x, axes=(-2, -1)).astype(jnp.complex64)
    ref_spec = _mlp_ref(xs, module.w0, module.wout)

    got_f32 = spectral_mlp_pallas(xs, module.w0_block, module.wout_block)
    got_f32 = jax.block_until_ready(got_f32)
    assert jnp.allclose(got_f32, ref_spec, atol=1e-3, rtol=1e-3), \
        "f32 mismatch vs reference"

    # bf16 MXU-input path (recommended on v6e/v7x for production channel counts);
    # looser tolerance due to bf16 mantissa loss on spectral coefficients.
    got_bf16 = spectral_mlp_pallas(xs, module.w0_block, module.wout_block,
                                   compute_dtype=jnp.bfloat16)
    got_bf16 = jax.block_until_ready(got_bf16)
    rel = jnp.linalg.norm(got_bf16 - ref_spec) / jnp.linalg.norm(ref_spec)
    assert float(rel) < 5e-2, f"bf16 relative error too large: {float(rel)}"

    print("KERNEL_OK")
</pallas_src>

<mosaic_0001>
module attributes {stable_mosaic.version = 11 : i64} {
  func.func @spectral_mlp_kernel(%arg0: i32, %arg1: memref<288x8xf32, #tpu.memory_space<vmem>>, %arg2: memref<8x16xf32, #tpu.memory_space<vmem>>, %arg3: memref<16x8xf32, #tpu.memory_space<vmem>>, %arg4: memref<288x8xf32, #tpu.memory_space<vmem>>) attributes {dimension_semantics = [#tpu.dimension_semantics<parallel>], iteration_bounds = array<i64: 1>, scalar_prefetch = 0 : i64, scratch_operands = 0 : i64, tpu.core_type = #tpu.core_type<tc>, window_params = [{transform_indices = @transform_0, window_bounds = array<i64: 288, 8>}, {pipeline_mode = #tpu.pipeline_mode<synchronous>, transform_indices = @transform_1, window_bounds = array<i64: 8, 16>}, {pipeline_mode = #tpu.pipeline_mode<synchronous>, transform_indices = @transform_2, window_bounds = array<i64: 16, 8>}, {transform_indices = @transform_3, window_bounds = array<i64: 288, 8>}]} {
    %c0 = arith.constant 0 : index
    %c0_0 = arith.constant 0 : index
    %0 = vector.load %arg1[%c0, %c0_0] : memref<288x8xf32, #tpu.memory_space<vmem>>, vector<288x8xf32>
    %c0_1 = arith.constant 0 : index
    %c0_2 = arith.constant 0 : index
    %1 = vector.load %arg2[%c0_1, %c0_2] : memref<8x16xf32, #tpu.memory_space<vmem>>, vector<8x16xf32>
    %cst = arith.constant dense<0.000000e+00> : vector<288x16xf32>
    %2 = tpu.matmul %0, %1, %cst {dimension_numbers = #tpu.dot_dimension_numbers<[1], [0], [0], [1], [0, 0, 1, 1], [], []>} : vector<288x8xf32>, vector<8x16xf32>, vector<288x16xf32> -> vector<288x16xf32>
    %3 = tpu.iota {dimensions = array<i32: 1>} : vector<288x16xi32>
    %c8_i32 = arith.constant 8 : i32
    %4 = vector.broadcast %c8_i32 : i32 to vector<288x16xi32>
    %5 = arith.cmpi slt, %3, %4 : vector<288x16xi32>
    %cst_3 = arith.constant 0.000000e+00 : f32
    %6 = vector.broadcast %cst_3 : f32 to vector<288x16xf32>
    %7 = arith.maximumf %2, %6 : vector<288x16xf32>
    %8 = arith.select %5, %7, %2 : vector<288x16xi1>, vector<288x16xf32>
    %c0_4 = arith.constant 0 : index
    %c0_5 = arith.constant 0 : index
    %9 = vector.load %arg3[%c0_4, %c0_5] : memref<16x8xf32, #tpu.memory_space<vmem>>, vector<16x8xf32>
    %cst_6 = arith.constant dense<0.000000e+00> : vector<288x8xf32>
    %10 = tpu.matmul %8, %9, %cst_6 {dimension_numbers = #tpu.dot_dimension_numbers<[1], [0], [0], [1], [0, 0, 1, 1], [], []>} : vector<288x16xf32>, vector<16x8xf32>, vector<288x8xf32> -> vector<288x8xf32>
    %c0_7 = arith.constant 0 : index
    %c0_8 = arith.constant 0 : index
    %11 = vector.load %arg4[%c0_7, %c0_8] : memref<288x8xf32, #tpu.memory_space<vmem>>, vector<288x8xf32>
    tpu.vector_store %arg4[%c0_7, %c0_8], %10 {strides = array<i32>} : memref<288x8xf32, #tpu.memory_space<vmem>>, vector<288x8xf32>,
    return
  }
  func.func @transform_0(%arg0: i32) -> (i32, i32) {
    %c0_i32 = arith.constant 0 : i32
    %c0_i32_0 = arith.constant 0 : i32
    return %arg0, %c0_i32 : i32, i32
  }
  func.func @transform_1(%arg0: i32) -> (i32, i32) {
    %c0_i32 = arith.constant 0 : i32
    %c0_i32_0 = arith.constant 0 : i32
    %c0_i32_1 = arith.constant 0 : i32
    return %c0_i32, %c0_i32_0 : i32, i32
  }
  func.func @transform_2(%arg0: i32) -> (i32, i32) {
    %c0_i32 = arith.constant 0 : i32
    %c0_i32_0 = arith.constant 0 : i32
    %c0_i32_1 = arith.constant 0 : i32
    return %c0_i32, %c0_i32_0 : i32, i32
  }
  func.func @transform_3(%arg0: i32) -> (i32, i32) {
    %c0_i32 = arith.constant 0 : i32
    %c0_i32_0 = arith.constant 0 : i32
    return %arg0, %c0_i32 : i32, i32
  }
}

</mosaic_0001>

<bundles_post_ra>
// kernel: tpu_custom_call.1
= control target key start
LH: loop header
LB: loop body
LE: loop exit
PB: predicated region body
PF: predicated region fallthrough
CT: control target
= control target key end

     0   :  { %vm51_vm0 = vcmask 64512   ;;  %v405_v40 = vlaneseq  ;;  %vm482_vm2 = vcmask 130048   ;;  %s1569_s1 = inlined_call_operand.vmem [shape: f32[8,16], index: 1, kind: input, shape index: {}]   ;;  %s1570_s0 = inlined_call_operand.vmem [shape: f32[288,8], index: 0, kind: input, shape index: {}]   ;;  %s1571_s2 = inlined_call_operand.vmem [shape: f32[16,8], index: 2, kind: input, shape index: {}]   ;;  %s1572_s3 = inlined_call_operand.vmem [shape: f32[288,8], index: 3, kind: output, shape index: {}]  }
   0x1   :  { %v50_v0 = vld [vmem:[%s1569_s1] sm:$0xff]  ;;  %v15_v2 = vld [vmem:[%s1570_s0 + $0x8] sm:$0xff]  ;;  %v16_v3 = vld [vmem:[%s1570_s0 + $0x10] sm:$0xff] }
   0x2   :  { %v14_v1 = vld [vmem:[%s1570_s0] sm:$0xff]  ;;  %1023 = vmatprep.subr.mxu0 %v50_v0  ;;  %v17_v4 = vld [vmem:[%s1570_s0 + $0x18] sm:$0xff]  ;;  %v19_v6 = vld [vmem:[%s1570_s0 + $0x28] sm:$0xff]  ;;  %v1314_v41 = vand.u32 127, %v405_v40 }
   0x3   :  { %1025 = vmatprep.mubr.msk.f32.mxu0 %vm51_vm0, %v14_v1  ;;  %1024 = vmatpush3.msra.mxu0 %v50_v0  ;;  %v18_v5 = vld [vmem:[%s1570_s0 + $0x20] sm:$0xff]  ;;  %v20_v7 = vld [vmem:[%s1570_s0 + $0x30] sm:$0xff]  ;;  %v21_v8 = vld [vmem:[%s1570_s0 + $0x38] sm:$0xff] }
   0x4   :  { %1026 = vmatmul.mubr.msk.f32.vlgmr.msra.gmra.mrb[0].mxu0 %vm51_vm0, %v15_v2  ;;  %v22_v9 = vld [vmem:[%s1570_s0 + $0x40] sm:$0xff]  ;;  %v23_v10 = vld [vmem:[%s1570_s0 + $0x48] sm:$0xff]  ;;  %v24_v11 = vld [vmem:[%s1570_s0 + $0x50] sm:$0xff]  ;;  %vm407_vm1 = vcmp.lt.s32.totalorder %v1314_v41, 8 }
   0x5   :  { %1028 = vmatprep.mubr.msk.f32.mxu0 %vm51_vm0, %v16_v3  ;;  %v25_v12 = vld [vmem:[%s1570_s0 + $0x58] sm:$0xff]  ;;  %v26_v13 = vld [vmem:[%s1570_s0 + $0x60] sm:$0xff]  ;;  %v27_v14 = vld [vmem:[%s1570_s0 + $0x68] sm:$0xff] }
   0x6   :  { %v28_v15 = vld [vmem:[%s1570_s0 + $0x70] sm:$0xff]  ;;  %v29_v16 = vld [vmem:[%s1570_s0 + $0x78] sm:$0xff]  ;;  %v30_v17 = vld [vmem:[%s1570_s0 + $0x80] sm:$0xff] }
   0x7   :  { %v31_v18 = vld [vmem:[%s1570_s0 + $0x88] sm:$0xff]  ;;  %v32_v19 = vld [vmem:[%s1570_s0 + $0x90] sm:$0xff]  ;;  %v33_v20 = vld [vmem:[%s1570_s0 + $0x98] sm:$0xff] }
   0x8   :  { %1029 = vmatmul.mubr.msk.f32.gmra.mrb[2].mxu0 %vm51_vm0, %v17_v4  ;;  %v34_v21 = vld [vmem:[%s1570_s0 + $0xa0] sm:$0xff]  ;;  %v35_v22 = vld [vmem:[%s1570_s0 + $0xa8] sm:$0xff]  ;;  %v36_v23 = vld [vmem:[%s1570_s0 + $0xb0] sm:$0xff] }
   0x9   :  { %1031 = vmatprep.mubr.msk.f32.mxu0 %vm51_vm0, %v18_v5  ;;  %v37_v24 = vld [vmem:[%s1570_s0 + $0xb8] sm:$0xff]  ;;  %v38_v25 = vld [vmem:[%s1570_s0 + $0xc0] sm:$0xff]  ;;  %v39_v26 = vld [vmem:[%s1570_s0 + $0xc8] sm:$0xff] }
   0xa   :  { %v40_v27 = vld [vmem:[%s1570_s0 + $0xd0] sm:$0xff]  ;;  %v41_v28 = vld [vmem:[%s1570_s0 + $0xd8] sm:$0xff]  ;;  %v42_v29 = vld [vmem:[%s1570_s0 + $0xe0] sm:$0xff] }
   0xb   :  { %v43_v30 = vld [vmem:[%s1570_s0 + $0xe8] sm:$0xff]  ;;  %v44_v31 = vld [vmem:[%s1570_s0 + $0xf0] sm:$0xff]  ;;  %v45_v32 = vld [vmem:[%s1570_s0 + $0xf8] sm:$0xff] }
   0xc   :  { %1032 = vmatmul.mubr.msk.f32.gmra.mrb[4].mxu0 %vm51_vm0, %v19_v6  ;;  %v46_v33 = vld [vmem:[%s1570_s0 + $0x100] sm:$0xff]  ;;  %v47_v34 = vld [vmem:[%s1570_s0 + $0x108] sm:$0xff]  ;;  %v48_v35 = vld [vmem:[%s1570_s0 + $0x110] sm:$0xff] }
   0xd   :  { %1034 = vmatprep.mubr.msk.f32.mxu0 %vm51_vm0, %v20_v7  ;;  %v49_v36 = vld [vmem:[%s1570_s0 + $0x118] sm:$0xff]  ;;  %v480_v37 = vld [vmem:[%s1571_s2] sm:$0xff]  ;;  %v481_v38 = vld [vmem:[%s1571_s2 + $0x8] sm:$0xff] }
   0xe   :  { %v1137_v39 = vpack.c.bf16 %v481_v38, %v480_v37 }
  0x10   :  { %1035 = vmatmul.mubr.msk.f32.gmra.mrb[6].mxu0 %vm51_vm0, %v21_v8  ;;  %1138 = vmatprep.subr.bf16.mxu1 %v1137_v39 }
  0x11   :  { %1037 = vmatprep.mubr.msk.f32.mxu0 %vm51_vm0, %v22_v9  ;;  %1140 = vmatpush3.bf16.msra.mxu1 %v1137_v39 }
  0x14   :  { %1038 = vmatmul.mubr.msk.f32.gmra.mrb[8].mxu0 %vm51_vm0, %v23_v10 }
  0x15   :  { %1040 = vmatprep.mubr.msk.f32.mxu0 %vm51_vm0, %v24_v11 }
  0x18   :  { %1041 = vmatmul.mubr.msk.f32.gmra.mrb[10].mxu0 %vm51_vm0, %v25_v12 }
  0x19   :  { %1043 = vmatprep.mubr.msk.f32.mxu0 %vm51_vm0, %v26_v13 }
  0x1c   :  { %1044 = vmatmul.mubr.msk.f32.gmra.mrb[12].mxu0 %vm51_vm0, %v27_v14 }
  0x1d   :  { %1046 = vmatprep.mubr.msk.f32.mxu0 %vm51_vm0, %v28_v15 }
  0x20   :  { %1047 = vmatmul.mubr.msk.f32.gmra.mrb[14].mxu0 %vm51_vm0, %v29_v16 }
  0x21   :  { %1049 = vmatprep.mubr.msk.f32.mxu0 %vm51_vm0, %v30_v17 }
  0x24   :  { %1050 = vmatmul.mubr.msk.f32.gmra.mrb[16].mxu0 %vm51_vm0, %v31_v18 }
  0x25   :  { %1052 = vmatprep.mubr.msk.f32.mxu0 %vm51_vm0, %v32_v19 }
  0x28   :  { %1053 = vmatmul.mubr.msk.f32.gmra.mrb[18].mxu0 %vm51_vm0, %v33_v20 }
  0x29   :  { %1055 = vmatprep.mubr.msk.f32.mxu0 %vm51_vm0, %v34_v21 }
  0x2c   :  { %1056 = vmatmul.mubr.msk.f32.gmra.mrb[20].mxu0 %vm51_vm0, %v35_v22 }
  0x2d   :  { %1058 = vmatprep.mubr.msk.f32.mxu0 %vm51_vm0, %v36_v23 }
  0x30   :  { %1059 = vmatmul.mubr.msk.f32.gmra.mrb[22].mxu0 %vm51_vm0, %v37_v24 }
  0x31   :  { %1061 = vmatprep.mubr.msk.f32.mxu0 %vm51_vm0, %v38_v25 }
  0x34   :  { %1062 = vmatmul.mubr.msk.f32.gmra.mrb[24].mxu0 %vm51_vm0, %v39_v26 }
  0x35   :  { %1064 = vmatprep.mubr.msk.f32.mxu0 %vm51_vm0, %v40_v27 }
  0x38   :  { %1065 = vmatmul.mubr.msk.f32.gmra.mrb[26].mxu0 %vm51_vm0, %v41_v28 }
  0x39   :  { %1067 = vmatprep.mubr.msk.f32.mxu0 %vm51_vm0, %v42_v29 }
  0x3c   :  { %1068 = vmatmul.mubr.msk.f32.gmra.mrb[28].mxu0 %vm51_vm0, %v43_v30 }
  0x3d   :  { %1070 = vmatprep.mubr.msk.f32.mxu0 %vm51_vm0, %v44_v31 }
  0x40   :  { %1071 = vmatmul.mubr.msk.f32.gmra.mrb[30].mxu0 %vm51_vm0, %v45_v32 }
  0x41   :  { %1073 = vmatprep.mubr.msk.f32.mxu0 %vm51_vm0, %v46_v33 }
  0x44   :  { %1074 = vmatmul.mubr.msk.f32.gmra.mrb[32].mxu0 %vm51_vm0, %v47_v34 }
  0x45   :  { %1076 = vmatprep.mubr.msk.f32.mxu0 %vm51_vm0, %v48_v35 }
  0x48   :  { %1077 = vmatmul.mubr.msk.f32.gmra.mrb[34].mxu0 %vm51_vm0, %v49_v36 }
  0xd7   :  { %v1027_v42 = vpop.f32.mrb[0].mxu0 }
  0xd8   :  { %v409_v43 = vmax.f32 %v1027_v42, 0.0  ;;  %v226_v44 = vpop.f32.mrb[1].mxu0 }
  0xd9   :  { %v408_v45 = vmax.f32 %v226_v44, 0.0 }
  0xda   :  { %v445_v48 = vsel %vm407_vm1, %v409_v43, %v1027_v42 }
  0xdb   :  { %v1030_v46 = vpop.f32.mrb[2].mxu0  ;;  %v444_v47 = vsel %vm407_vm1, %v408_v45, %v226_v44 }
  0xdc   :  { %v411_v49 = vmax.f32 %v1030_v46, 0.0  ;;  %v236_v50 = vpop.f32.mrb[3].mxu0  ;;  %1083 = vmatprep.mubr.msk.f32.mxu1 %vm482_vm2, %v444_v47 }
  0xdd   :  { %v410_v51 = vmax.f32 %v236_v50, 0.0  ;;  %1084 = vmatmul.mubr.msk.f32.vlgmr.msra.gmra.mrb[0].mxu1 %vm482_vm2, %v445_v48 }
  0xde   :  { %v447_v54 = vsel %vm407_vm1, %v411_v49, %v1030_v46 }
  0xdf   :  { %v446_v52 = vsel %vm407_vm1, %v410_v51, %v236_v50  ;;  %v1033_v53 = vpop.f32.mrb[4].mxu0 }
  0xe0   :  { %v413_v55 = vmax.f32 %v1033_v53, 0.0  ;;  %v246_v56 = vpop.f32.mrb[5].mxu0  ;;  %1086 = vmatprep.mubr.msk.f32.mxu1 %vm482_vm2, %v446_v52 }
  0xe1   :  { %v412_v57 = vmax.f32 %v246_v56, 0.0  ;;  %1087 = vmatmul.mubr.msk.f32.gmra.mrb[2].mxu1 %vm482_vm2, %v447_v54 }
  0xe2   :  { %v449_v60 = vsel %vm407_vm1, %v413_v55, %v1033_v53 }
  0xe3   :  { %v448_v58 = vsel %vm407_vm1, %v412_v57, %v246_v56  ;;  %v1036_v59 = vpop.f32.mrb[6].mxu0 }
  0xe4   :  { %v415_v61 = vmax.f32 %v1036_v59, 0.0  ;;  %v256_v62 = vpop.f32.mrb[7].mxu0  ;;  %1089 = vmatprep.mubr.msk.f32.mxu1 %vm482_vm2, %v448_v58 }
  0xe5   :  { %v414_v63 = vmax.f32 %v256_v62, 0.0  ;;  %1090 = vmatmul.mubr.msk.f32.gmra.mrb[4].mxu1 %vm482_vm2, %v449_v60 }
  0xe6   :  { %v451_v2 = vsel %vm407_vm1, %v415_v61, %v1036_v59 }
  0xe7   :  { %v450_v0 = vsel %vm407_vm1, %v414_v63, %v256_v62  ;;  %v1039_v1 = vpop.f32.mrb[8].mxu0 }
  0xe8   :  { %v417_v3 = vmax.f32 %v1039_v1, 0.0  ;;  %v266_v4 = vpop.f32.mrb[9].mxu0  ;;  %1092 = vmatprep.mubr.msk.f32.mxu1 %vm482_vm2, %v450_v0 }
  0xe9   :  { %v416_v5 = vmax.f32 %v266_v4, 0.0  ;;  %1093 = vmatmul.mubr.msk.f32.gmra.mrb[6].mxu1 %vm482_vm2, %v451_v2 }
  0xea   :  { %v453_v8 = vsel %vm407_vm1, %v417_v3, %v1039_v1 }
  0xeb   :  { %v452_v6 = vsel %vm407_vm1, %v416_v5, %v266_v4  ;;  %v1042_v7 = vpop.f32.mrb[10].mxu0 }
  0xec   :  { %v419_v9 = vmax.f32 %v1042_v7, 0.0  ;;  %v276_v10 = vpop.f32.mrb[11].mxu0  ;;  %1095 = vmatprep.mubr.msk.f32.mxu1 %vm482_vm2, %v452_v6 }
  0xed   :  { %v418_v11 = vmax.f32 %v276_v10, 0.0  ;;  %1096 = vmatmul.mubr.msk.f32.gmra.mrb[8].mxu1 %vm482_vm2, %v453_v8 }
  0xee   :  { %v455_v14 = vsel %vm407_vm1, %v419_v9, %v1042_v7 }
  0xef   :  { %v454_v12 = vsel %vm407_vm1, %v418_v11, %v276_v10  ;;  %v1045_v13 = vpop.f32.mrb[12].mxu0 }
  0xf0   :  { %v421_v15 = vmax.f32 %v1045_v13, 0.0  ;;  %v286_v16 = vpop.f32.mrb[13].mxu0  ;;  %1098 = vmatprep.mubr.msk.f32.mxu1 %vm482_vm2, %v454_v12 }
  0xf1   :  { %v420_v17 = vmax.f32 %v286_v16, 0.0  ;;  %1099 = vmatmul.mubr.msk.f32.gmra.mrb[10].mxu1 %vm482_vm2, %v455_v14 }
  0xf2   :  { %v457_v20 = vsel %vm407_vm1, %v421_v15, %v1045_v13 }
  0xf3   :  { %v456_v18 = vsel %vm407_vm1, %v420_v17, %v286_v16  ;;  %v1048_v19 = vpop.f32.mrb[14].mxu0 }
  0xf4   :  { %v423_v21 = vmax.f32 %v1048_v19, 0.0  ;;  %v296_v22 = vpop.f32.mrb[15].mxu0  ;;  %1101 = vmatprep.mubr.msk.f32.mxu1 %vm482_vm2, %v456_v18 }
  0xf5   :  { %v422_v23 = vmax.f32 %v296_v22, 0.0  ;;  %1102 = vmatmul.mubr.msk.f32.gmra.mrb[12].mxu1 %vm482_vm2, %v457_v20 }
  0xf6   :  { %v459_v26 = vsel %vm407_vm1, %v423_v21, %v1048_v19 }
  0xf7   :  { %v458_v24 = vsel %vm407_vm1, %v422_v23, %v296_v22  ;;  %v1051_v25 = vpop.f32.mrb[16].mxu0 }
  0xf8   :  { %v425_v27 = vmax.f32 %v1051_v25, 0.0  ;;  %v306_v28 = vpop.f32.mrb[17].mxu0  ;;  %1104 = vmatprep.mubr.msk.f32.mxu1 %vm482_vm2, %v458_v24 }
  0xf9   :  { %v424_v29 = vmax.f32 %v306_v28, 0.0  ;;  %1105 = vmatmul.mubr.msk.f32.gmra.mrb[14].mxu1 %vm482_vm2, %v459_v26 }
  0xfa   :  { %v461_v32 = vsel %vm407_vm1, %v425_v27, %v1051_v25 }
  0xfb   :  { %v460_v30 = vsel %vm407_vm1, %v424_v29, %v306_v28  ;;  %v1054_v31 = vpop.f32.mrb[18].mxu0 }
  0xfc   :  { %v427_v33 = vmax.f32 %v1054_v31, 0.0  ;;  %v316_v34 = vpop.f32.mrb[19].mxu0  ;;  %1107 = vmatprep.mubr.msk.f32.mxu1 %vm482_vm2, %v460_v30 }
  0xfd   :  { %v426_v35 = vmax.f32 %v316_v34, 0.0  ;;  %1108 = vmatmul.mubr.msk.f32.gmra.mrb[16].mxu1 %vm482_vm2, %v461_v32 }
  0xfe   :  { %v463_v38 = vsel %vm407_vm1, %v427_v33, %v1054_v31 }
  0xff   :  { %v462_v36 = vsel %vm407_vm1, %v426_v35, %v316_v34  ;;  %v1057_v37 = vpop.f32.mrb[20].mxu0 }
 0x100   :  { %v429_v39 = vmax.f32 %v1057_v37, 0.0  ;;  %v326_v40 = vpop.f32.mrb[21].mxu0  ;;  %1110 = vmatprep.mubr.msk.f32.mxu1 %vm482_vm2, %v462_v36 }
 0x101   :  { %v428_v42 = vmax.f32 %v326_v40, 0.0  ;;  %1111 = vmatmul.mubr.msk.f32.gmra.mrb[18].mxu1 %vm482_vm2, %v463_v38 }
 0x102   :  { %v465_v45 = vsel %vm407_vm1, %v429_v39, %v1057_v37 }
 0x103   :  { %v464_v43 = vsel %vm407_vm1, %v428_v42, %v326_v40  ;;  %v1060_v44 = vpop.f32.mrb[22].mxu0 }
 0x104   :  { %v431_v46 = vmax.f32 %v1060_v44, 0.0  ;;  %v336_v47 = vpop.f32.mrb[23].mxu0  ;;  %1113 = vmatprep.mubr.msk.f32.mxu1 %vm482_vm2, %v464_v43 }
 0x105   :  { %v430_v48 = vmax.f32 %v336_v47, 0.0  ;;  %1114 = vmatmul.mubr.msk.f32.gmra.mrb[20].mxu1 %vm482_vm2, %v465_v45 }
 0x106   :  { %v467_v51 = vsel %vm407_vm1, %v431_v46, %v1060_v44 }
 0x107   :  { %v466_v49 = vsel %vm407_vm1, %v430_v48, %v336_v47  ;;  %v1063_v50 = vpop.f32.mrb[24].mxu0 }
 0x108   :  { %v433_v52 = vmax.f32 %v1063_v50, 0.0  ;;  %v346_v53 = vpop.f32.mrb[25].mxu0  ;;  %1116 = vmatprep.mubr.msk.f32.mxu1 %vm482_vm2, %v466_v49 }
 0x109   :  { %v432_v54 = vmax.f32 %v346_v53, 0.0  ;;  %1117 = vmatmul.mubr.msk.f32.gmra.mrb[22].mxu1 %vm482_vm2, %v467_v51 }
 0x10a   :  { %v469_v57 = vsel %vm407_vm1, %v433_v52, %v1063_v50 }
 0x10b   :  { %v468_v55 = vsel %vm407_vm1, %v432_v54, %v346_v53  ;;  %v1066_v56 = vpop.f32.mrb[26].mxu0 }
 0x10c   :  { %v435_v58 = vmax.f32 %v1066_v56, 0.0  ;;  %v356_v59 = vpop.f32.mrb[27].mxu0  ;;  %1119 = vmatprep.mubr.msk.f32.mxu1 %vm482_vm2, %v468_v55 }
 0x10d   :  { %v434_v60 = vmax.f32 %v356_v59, 0.0  ;;  %1120 = vmatmul.mubr.msk.f32.gmra.mrb[24].mxu1 %vm482_vm2, %v469_v57 }
 0x10e   :  { %v471_v63 = vsel %vm407_vm1, %v435_v58, %v1066_v56 }
 0x10f   :  { %v470_v61 = vsel %vm407_vm1, %v434_v60, %v356_v59  ;;  %v1069_v62 = vpop.f32.mrb[28].mxu0 }
 0x110   :  { %v437_v0 = vmax.f32 %v1069_v62, 0.0  ;;  %v366_v1 = vpop.f32.mrb[29].mxu0  ;;  %1122 = vmatprep.mubr.msk.f32.mxu1 %vm482_vm2, %v470_v61 }
 0x111   :  { %v436_v2 = vmax.f32 %v366_v1, 0.0  ;;  %1123 = vmatmul.mubr.msk.f32.gmra.mrb[26].mxu1 %vm482_vm2, %v471_v63 }
 0x112   :  { %v473_v5 = vsel %vm407_vm1, %v437_v0, %v1069_v62 }
 0x113   :  { %v472_v3 = vsel %vm407_vm1, %v436_v2, %v366_v1  ;;  %v1072_v4 = vpop.f32.mrb[30].mxu0 }
 0x114   :  { %v439_v6 = vmax.f32 %v1072_v4, 0.0  ;;  %v376_v7 = vpop.f32.mrb[31].mxu0  ;;  %1125 = vmatprep.mubr.msk.f32.mxu1 %vm482_vm2, %v472_v3 }
 0x115   :  { %v438_v8 = vmax.f32 %v376_v7, 0.0  ;;  %1126 = vmatmul.mubr.msk.f32.gmra.mrb[28].mxu1 %vm482_vm2, %v473_v5 }
 0x116   :  { %v475_v11 = vsel %vm407_vm1, %v439_v6, %v1072_v4 }
 0x117   :  { %v474_v9 = vsel %vm407_vm1, %v438_v8, %v376_v7  ;;  %v1075_v10 = vpop.f32.mrb[32].mxu0 }
 0x118   :  { %v441_v12 = vmax.f32 %v1075_v10, 0.0  ;;  %v386_v13 = vpop.f32.mrb[33].mxu0  ;;  %1128 = vmatprep.mubr.msk.f32.mxu1 %vm482_vm2, %v474_v9 }
 0x119   :  { %v440_v14 = vmax.f32 %v386_v13, 0.0  ;;  %1129 = vmatmul.mubr.msk.f32.gmra.mrb[30].mxu1 %vm482_vm2, %v475_v11 }
 0x11a   :  { %v477_v17 = vsel %vm407_vm1, %v441_v12, %v1075_v10 }
 0x11b   :  { %v476_v15 = vsel %vm407_vm1, %v440_v14, %v386_v13  ;;  %v1078_v16 = vpop.f32.mrb[34].mxu0 }
 0x11c   :  { %v443_v18 = vmax.f32 %v1078_v16, 0.0  ;;  %v396_v19 = vpop.f32.mrb[35].mxu0  ;;  %1131 = vmatprep.mubr.msk.f32.mxu1 %vm482_vm2, %v476_v15 }
 0x11d   :  { %v442_v20 = vmax.f32 %v396_v19, 0.0  ;;  %1132 = vmatmul.mubr.msk.f32.gmra.mrb[32].mxu1 %vm482_vm2, %v477_v17 }
 0x11e   :  { %v479_v22 = vsel %vm407_vm1, %v443_v18, %v1078_v16 }
 0x11f   :  { %v478_v21 = vsel %vm407_vm1, %v442_v20, %v396_v19 }
 0x120   :  { %1134 = vmatprep.mubr.msk.f32.mxu1 %vm482_vm2, %v478_v21 }
 0x121   :  { %1135 = vmatmul.mubr.msk.f32.gmra.mrb[34].mxu1 %vm482_vm2, %v479_v22 }
 0x1b0   :  { %v1085_v23 = vpop.f32.mrb[0].mxu1 }
 0x1b1   :  { %837 = vst.msk [vmem:[%s1572_s3 + $0x8] sm:$0xff] %vm51_vm0, %v1085_v23  ;;  %v657_v24 = vpop.f32.mrb[1].mxu1 }
 0x1b2   :  { %836 = vst.msk [vmem:[%s1572_s3] sm:$0xff] %vm51_vm0, %v657_v24 }
 0x1b4   :  { %v1088_v25 = vpop.f32.mrb[2].mxu1 }
 0x1b5   :  { %839 = vst.msk [vmem:[%s1572_s3 + $0x18] sm:$0xff] %vm51_vm0, %v1088_v25  ;;  %v667_v41 = vpop.f32.mrb[3].mxu1 }
 0x1b6   :  { %838 = vst.msk [vmem:[%s1572_s3 + $0x10] sm:$0xff] %vm51_vm0, %v667_v41 }
 0x1b8   :  { %v1091_v26 = vpop.f32.mrb[4].mxu1 }
 0x1b9   :  { %841 = vst.msk [vmem:[%s1572_s3 + $0x28] sm:$0xff] %vm51_vm0, %v1091_v26  ;;  %v677_v27 = vpop.f32.mrb[5].mxu1 }
 0x1ba   :  { %840 = vst.msk [vmem:[%s1572_s3 + $0x20] sm:$0xff] %vm51_vm0, %v677_v27 }
 0x1bc   :  { %v1094_v28 = vpop.f32.mrb[6].mxu1 }
 0x1bd   :  { %843 = vst.msk [vmem:[%s1572_s3 + $0x38] sm:$0xff] %vm51_vm0, %v1094_v28  ;;  %v687_v29 = vpop.f32.mrb[7].mxu1 }
 0x1be   :  { %842 = vst.msk [vmem:[%s1572_s3 + $0x30] sm:$0xff] %vm51_vm0, %v687_v29 }
 0x1c0   :  { %v1097_v30 = vpop.f32.mrb[8].mxu1 }
 0x1c1   :  { %845 = vst.msk [vmem:[%s1572_s3 + $0x48] sm:$0xff] %vm51_vm0, %v1097_v30  ;;  %v697_v31 = vpop.f32.mrb[9].mxu1 }
 0x1c2   :  { %844 = vst.msk [vmem:[%s1572_s3 + $0x40] sm:$0xff] %vm51_vm0, %v697_v31 }
 0x1c4   :  { %v1100_v32 = vpop.f32.mrb[10].mxu1 }
 0x1c5   :  { %847 = vst.msk [vmem:[%s1572_s3 + $0x58] sm:$0xff] %vm51_vm0, %v1100_v32  ;;  %v707_v33 = vpop.f32.mrb[11].mxu1 }
 0x1c6   :  { %846 = vst.msk [vmem:[%s1572_s3 + $0x50] sm:$0xff] %vm51_vm0, %v707_v33 }
 0x1c8   :  { %v1103_v34 = vpop.f32.mrb[12].mxu1 }
 0x1c9   :  { %849 = vst.msk [vmem:[%s1572_s3 + $0x68] sm:$0xff] %vm51_vm0, %v1103_v34  ;;  %v717_v35 = vpop.f32.mrb[13].mxu1 }
 0x1ca   :  { %848 = vst.msk [vmem:[%s1572_s3 + $0x60] sm:$0xff] %vm51_vm0, %v717_v35 }
 0x1cc   :  { %v1106_v36 = vpop.f32.mrb[14].mxu1 }
 0x1cd   :  { %851 = vst.msk [vmem:[%s1572_s3 + $0x78] sm:$0xff] %vm51_vm0, %v1106_v36  ;;  %v727_v37 = vpop.f32.mrb[15].mxu1 }
 0x1ce   :  { %850 = vst.msk [vmem:[%s1572_s3 + $0x70] sm:$0xff] %vm51_vm0, %v727_v37 }
 0x1d0   :  { %v1109_v38 = vpop.f32.mrb[16].mxu1 }
 0x1d1   :  { %853 = vst.msk [vmem:[%s1572_s3 + $0x88] sm:$0xff] %vm51_vm0, %v1109_v38  ;;  %v737_v39 = vpop.f32.mrb[17].mxu1 }
 0x1d2   :  { %852 = vst.msk [vmem:[%s1572_s3 + $0x80] sm:$0xff] %vm51_vm0, %v737_v39 }
 0x1d4   :  { %v1112_v40 = vpop.f32.mrb[18].mxu1 }
 0x1d5   :  { %855 = vst.msk [vmem:[%s1572_s3 + $0x98] sm:$0xff] %vm51_vm0, %v1112_v40  ;;  %v747_v42 = vpop.f32.mrb[19].mxu1 }
 0x1d6   :  { %854 = vst.msk [vmem:[%s1572_s3 + $0x90] sm:$0xff] %vm51_vm0, %v747_v42 }
 0x1d8   :  { %v1115_v43 = vpop.f32.mrb[20].mxu1 }
 0x1d9   :  { %857 = vst.msk [vmem:[%s1572_s3 + $0xa8] sm:$0xff] %vm51_vm0, %v1115_v43  ;;  %v757_v44 = vpop.f32.mrb[21].mxu1 }
 0x1da   :  { %856 = vst.msk [vmem:[%s1572_s3 + $0xa0] sm:$0xff] %vm51_vm0, %v757_v44 }
 0x1dc   :  { %v1118_v45 = vpop.f32.mrb[22].mxu1 }
 0x1dd   :  { %859 = vst.msk [vmem:[%s1572_s3 + $0xb8] sm:$0xff] %vm51_vm0, %v1118_v45  ;;  %v767_v46 = vpop.f32.mrb[23].mxu1 }
 0x1de   :  { %858 = vst.msk [vmem:[%s1572_s3 + $0xb0] sm:$0xff] %vm51_vm0, %v767_v46 }
 0x1e0   :  { %v1121_v47 = vpop.f32.mrb[24].mxu1 }
 0x1e1   :  { %861 = vst.msk [vmem:[%s1572_s3 + $0xc8] sm:$0xff] %vm51_vm0, %v1121_v47  ;;  %v777_v48 = vpop.f32.mrb[25].mxu1 }
 0x1e2   :  { %860 = vst.msk [vmem:[%s1572_s3 + $0xc0] sm:$0xff] %vm51_vm0, %v777_v48 }
 0x1e4   :  { %v1124_v49 = vpop.f32.mrb[26].mxu1 }
 0x1e5   :  { %863 = vst.msk [vmem:[%s1572_s3 + $0xd8] sm:$0xff] %vm51_vm0, %v1124_v49  ;;  %v787_v50 = vpop.f32.mrb[27].mxu1 }
 0x1e6   :  { %862 = vst.msk [vmem:[%s1572_s3 + $0xd0] sm:$0xff] %vm51_vm0, %v787_v50 }
 0x1e8   :  { %v1127_v51 = vpop.f32.mrb[28].mxu1 }
 0x1e9   :  { %865 = vst.msk [vmem:[%s1572_s3 + $0xe8] sm:$0xff] %vm51_vm0, %v1127_v51  ;;  %v797_v52 = vpop.f32.mrb[29].mxu1 }
 0x1ea   :  { %864 = vst.msk [vmem:[%s1572_s3 + $0xe0] sm:$0xff] %vm51_vm0, %v797_v52 }
 0x1ec   :  { %v1130_v53 = vpop.f32.mrb[30].mxu1 }
 0x1ed   :  { %867 = vst.msk [vmem:[%s1572_s3 + $0xf8] sm:$0xff] %vm51_vm0, %v1130_v53  ;;  %v807_v54 = vpop.f32.mrb[31].mxu1 }
 0x1ee   :  { %866 = vst.msk [vmem:[%s1572_s3 + $0xf0] sm:$0xff] %vm51_vm0, %v807_v54 }
 0x1f0   :  { %v1133_v55 = vpop.f32.mrb[32].mxu1 }
 0x1f1   :  { %869 = vst.msk [vmem:[%s1572_s3 + $0x108] sm:$0xff] %vm51_vm0, %v1133_v55  ;;  %v817_v56 = vpop.f32.mrb[33].mxu1 }
 0x1f2   :  { %868 = vst.msk [vmem:[%s1572_s3 + $0x100] sm:$0xff] %vm51_vm0, %v817_v56 }
 0x1f4   :  { %v1136_v57 = vpop.f32.mrb[34].mxu1 }
 0x1f5   :  { %871 = vst.msk [vmem:[%s1572_s3 + $0x118] sm:$0xff] %vm51_vm0, %v1136_v57  ;;  %v827_v58 = vpop.f32.mrb[35].mxu1 }
 0x1f6   :  { %870 = vst.msk [vmem:[%s1572_s3 + $0x110] sm:$0xff] %vm51_vm0, %v827_v58 }

</bundles_post_ra>
